<compile_context>
chip_gen: v7x
topology: tpu7x:2x2x1
jax: 0.10.0
libtpu: 0.0.40
codegen_flags: <defaults>
</compile_context>

<pallas_src>
import functools

import jax
import jax.numpy as jnp
from jax.experimental import pallas as pl
from jax.experimental.pallas import tpu as pltpu


def _round_up(n, m):
    return ((n + m - 1) // m) * m


def _label_smoothing_kernel(x_ref, y_ref, o_ref, *, eps):
    x = x_ref[...].astype(jnp.float32)
    y = y_ref[...]

    # Stable softplus(-x) = -log(sigmoid(x)) = max(-x,0) + log(1 + exp(-|x|))
    sp = jnp.maximum(-x, 0.0) + jnp.log(1.0 + jnp.exp(-jnp.abs(x)))

    # pos (y==1): (1-eps/2)*sp       + (eps/2)*(x+sp) = sp + (eps/2)*x
    # neg (y!=1): (1-eps/2)*(x+sp)   + (eps/2)*sp     = sp + (1-eps/2)*x
    coef = jnp.where(y == 1, jnp.float32(eps * 0.5), jnp.float32(1.0 - eps * 0.5))
    o_ref[...] = (sp + x * coef).astype(o_ref.dtype)


def _xla_forward(x, y, eps):
    """Plain XLA elementwise fusion for tiny inputs (same math as the kernel)."""
    xf = x.astype(jnp.float32)
    sp = jnp.maximum(-xf, 0.0) + jnp.log(1.0 + jnp.exp(-jnp.abs(xf)))
    coef = jnp.where(y == 1, jnp.float32(eps * 0.5), jnp.float32(1.0 - eps * 0.5))
    return sp + xf * coef


def label_smoothing_loss(x, y, mask=None, *, eps=0.1, block_rows=None,
                         min_pallas_elems=1 << 20):
    """Forward pass of LabelSmoothingLoss.

    x: logits, y: binarized multi-label targets (same shape, any numeric dtype:
    f32/bf16 logits, f32/int8/bool targets all accepted without a wrapper cast).
    `mask` is accepted for API parity with the PyTorch module but is unused
    (the reference forward never touches it).
    Returns a float32 loss tensor with the same shape as x.
    """
    assert x.shape == y.shape, (x.shape, y.shape)
    orig_shape = x.shape
    out_dtype = jnp.float32
    n = int(x.size)
    if n == 0:
        return jnp.zeros(orig_shape, out_dtype)

    # Tiny inputs: fixed pallas_call launch/pipeline cost dominates -> XLA fusion.
    if n < min_pallas_elems:
        return _xla_forward(x, y, eps).reshape(orig_shape)

    # ---- Flatten to lane-dense 1-D tiles --------------------------------
    xf = x.reshape(-1)
    yf = y.reshape(-1)

    # Largest lane width (multiple of 128) that divides n -> no tail pad.
    lane = None
    for cand in (4096, 2048, 1024, 512, 256, 128):
        if n >= cand and n % cand == 0:
            lane = cand
            break
    if lane is None:
        lane = 1024 if n >= 1024 else 128

    n_pad = _round_up(n, lane)
    if n_pad != n:  # pad only the ragged tail (at most lane-1 elements)
        xf = jnp.pad(xf, (0, n_pad - n))
        yf = jnp.pad(yf, (0, n_pad - n))
    rows = n_pad // lane
    x2 = xf.reshape(rows, lane)
    y2 = yf.reshape(rows, lane)

    # Sublane granularity for the row axis, from the narrowest input dtype
    # (f32 -> 8, bf16 -> 16, int8/bool -> 32).
    min_sub = 8
    for dt in (jnp.dtype(x.dtype), jnp.dtype(y.dtype)):
        if dt.itemsize == 2:
            min_sub = max(min_sub, 16)
        elif dt.itemsize == 1:
            min_sub = max(min_sub, 32)

    x_b = jnp.dtype(x.dtype).itemsize
    y_b = jnp.dtype(y.dtype).itemsize
    o_b = jnp.dtype(out_dtype).itemsize
    bytes_per_elem = x_b + y_b + o_b

    if block_rows is None:
        budget = 12 * 1024 * 1024               # < v5e's 16 MiB default scoped VMEM
        per_row = lane * bytes_per_elem * 2     # x2 for double buffering
        cap = max(min_sub, (budget // per_row) // min_sub * min_sub)
        block_rows = min(cap, 4096)
    block_rows = max(min_sub, _round_up(block_rows, min_sub))
    block_rows = min(block_rows, _round_up(rows, min_sub))

    grid_n = pl.cdiv(rows, block_rows)
    # v7x megacore: a small odd grid leaves one TensorCore with extra work.
    # Shrink the block so the parallel axis splits evenly (tiles stay large
    # enough to remain at the HBM roofline).
    if grid_n >= 3 and grid_n % 2 == 1:
        br2 = max(min_sub, _round_up(pl.cdiv(rows, grid_n + 1), min_sub))
        if pl.cdiv(rows, br2) % 2 == 0:
            block_rows = br2
            grid_n = pl.cdiv(rows, br2)

    # Explicit scoped-VMEM limit: double-buffered block footprint + headroom
    # (always <= ~16 MiB here, legal on v5e/v6e/v7x).
    footprint = 2 * block_rows * lane * bytes_per_elem
    vmem_limit = int(footprint + (4 << 20))

    cost = pl.CostEstimate(
        flops=7 * n,
        transcendentals=2 * n,          # exp + log per element
        bytes_accessed=n * bytes_per_elem,
    )

    out = pl.pallas_call(
        functools.partial(_label_smoothing_kernel, eps=float(eps)),
        out_shape=jax.ShapeDtypeStruct((rows, lane), out_dtype),
        grid_spec=pltpu.PrefetchScalarGridSpec(
            num_scalar_prefetch=0,
            grid=(grid_n,),
            in_specs=[
                pl.BlockSpec((block_rows, lane), lambda i: (i, 0)),
                pl.BlockSpec((block_rows, lane), lambda i: (i, 0)),
            ],
            out_specs=pl.BlockSpec((block_rows, lane), lambda i: (i, 0)),
        ),
        compiler_params=pltpu.CompilerParams(
            dimension_semantics=("parallel",),
            vmem_limit_bytes=vmem_limit,
        ),
        cost_estimate=cost,
    )(x2, y2)

    out = out.reshape(-1)
    if n_pad != n:
        out = out[:n]
    return out.reshape(orig_shape)


def _reference(x, y, eps=0.1):
    # Direct transcription of the PyTorch forward (sigmoid + two logs).
    probs = jax.nn.sigmoid(x.astype(jnp.float32))
    a = 1.0 - eps / 2.0
    b = eps / 2.0
    pos = a * -jnp.log(probs) + b * -jnp.log(1.0 - probs)
    neg = a * -jnp.log(1.0 - probs) + b * -jnp.log(probs)
    return jnp.where(y == 1, pos, neg)


if __name__ == "__main__":
    key = jax.random.PRNGKey(0)
    kx, ky = jax.random.split(key)

    # Small shapes: batch=64, num_classes=90 (unaligned C exercises the
    # flattened lane-dense tiling with no class-axis padding).
    N, C = 64, 90
    x = jax.random.normal(kx, (N, C), dtype=jnp.float32)
    y = (jax.random.uniform(ky, (N, C)) > 0.5).astype(jnp.float32)
    mask = jnp.ones((N, C), dtype=jnp.float32)  # unused, API parity only

    ref = _reference(x, y)

    # 1) Pallas kernel path (forced: the test shape is below the default
    #    XLA-fallback threshold for tiny inputs).
    out = jax.block_until_ready(label_smoothing_loss(x, y, mask, min_pallas_elems=0))
    assert out.shape == (N, C) and out.dtype == jnp.float32
    assert jnp.allclose(out, ref, atol=1e-5, rtol=1e-5), (
        float(jnp.max(jnp.abs(out - ref))))

    # 2) Narrow-dtype path: bf16 logits + int8 targets (less HBM traffic),
    #    same kernel, upcast in-register.
    xb = x.astype(jnp.bfloat16)
    yi = y.astype(jnp.int8)
    out2 = jax.block_until_ready(
        label_smoothing_loss(xb, yi, mask, min_pallas_elems=0))
    ref2 = _reference(xb.astype(jnp.float32), y)
    assert jnp.allclose(out2, ref2, atol=2e-2, rtol=2e-2), (
        float(jnp.max(jnp.abs(out2 - ref2))))

    # 3) Default tiny-input path: plain XLA elementwise fusion.
    out3 = jax.block_until_ready(label_smoothing_loss(x, y, mask))
    assert jnp.allclose(out3, ref, atol=1e-5, rtol=1e-5)

    print("KERNEL_OK")
</pallas_src>

<mosaic_0001>
module attributes {stable_mosaic.version = 11 : i64} {
  func.func @_label_smoothing_kernel(%arg0: i32, %arg1: memref<48x128xf32, #tpu.memory_space<vmem>>, %arg2: memref<48x128xf32, #tpu.memory_space<vmem>>, %arg3: memref<48x128xf32, #tpu.memory_space<vmem>>) attributes {dimension_semantics = [#tpu.dimension_semantics<parallel>], iteration_bounds = array<i64: 1>, scalar_prefetch = 0 : i64, scratch_operands = 0 : i64, tpu.core_type = #tpu.core_type<tc>, window_params = [{transform_indices = @transform_0, window_bounds = array<i64: 48, 128>}, {transform_indices = @transform_1, window_bounds = array<i64: 48, 128>}, {transform_indices = @transform_2, window_bounds = array<i64: 48, 128>}]} {
    %c0 = arith.constant 0 : index
    %c0_0 = arith.constant 0 : index
    %0 = vector.load %arg1[%c0, %c0_0] : memref<48x128xf32, #tpu.memory_space<vmem>>, vector<48x128xf32>
    %c0_1 = arith.constant 0 : index
    %c0_2 = arith.constant 0 : index
    %1 = vector.load %arg2[%c0_1, %c0_2] : memref<48x128xf32, #tpu.memory_space<vmem>>, vector<48x128xf32>
    %cst = arith.constant 0.000000e+00 : f32
    %2 = vector.broadcast %cst : f32 to vector<48x128xf32>
    %3 = arith.subf %2, %0 : vector<48x128xf32>
    %cst_3 = arith.constant 0.000000e+00 : f32
    %4 = vector.broadcast %cst_3 : f32 to vector<48x128xf32>
    %5 = arith.maximumf %3, %4 : vector<48x128xf32>
    %6 = math.absf %0 : vector<48x128xf32>
    %cst_4 = arith.constant 0.000000e+00 : f32
    %7 = vector.broadcast %cst_4 : f32 to vector<48x128xf32>
    %8 = arith.subf %7, %6 : vector<48x128xf32>
    %9 = math.exp %8 : vector<48x128xf32>
    %cst_5 = arith.constant 1.000000e+00 : f32
    %10 = vector.broadcast %cst_5 : f32 to vector<48x128xf32>
    %11 = arith.addf %10, %9 : vector<48x128xf32>
    %12 = math.log %11 : vector<48x128xf32>
    %13 = arith.addf %5, %12 : vector<48x128xf32>
    %cst_6 = arith.constant 1.000000e+00 : f32
    %14 = vector.broadcast %cst_6 : f32 to vector<48x128xf32>
    %15 = arith.cmpf oeq, %1, %14 : vector<48x128xf32>
    %cst_7 = arith.constant 5.000000e-02 : f32
    %cst_8 = arith.constant 0.949999988 : f32
    %16 = vector.broadcast %cst_7 : f32 to vector<48x128xf32>
    %17 = vector.broadcast %cst_8 : f32 to vector<48x128xf32>
    %18 = arith.select %15, %16, %17 : vector<48x128xi1>, vector<48x128xf32>
    %19 = arith.mulf %0, %18 : vector<48x128xf32>
    %20 = arith.addf %13, %19 : vector<48x128xf32>
    %c0_9 = arith.constant 0 : index
    %c0_10 = arith.constant 0 : index
    %21 = vector.load %arg3[%c0_9, %c0_10] : memref<48x128xf32, #tpu.memory_space<vmem>>, vector<48x128xf32>
    tpu.vector_store %arg3[%c0_9, %c0_10], %20 {strides = array<i32>} : memref<48x128xf32, #tpu.memory_space<vmem>>, vector<48x128xf32>,
    return
  }
  func.func @transform_0(%arg0: i32) -> (i32, i32) {
    %c0_i32 = arith.constant 0 : i32
    %c0_i32_0 = arith.constant 0 : i32
    return %arg0, %c0_i32 : i32, i32
  }
  func.func @transform_1(%arg0: i32) -> (i32, i32) {
    %c0_i32 = arith.constant 0 : i32
    %c0_i32_0 = arith.constant 0 : i32
    return %arg0, %c0_i32 : i32, i32
  }
  func.func @transform_2(%arg0: i32) -> (i32, i32) {
    %c0_i32 = arith.constant 0 : i32
    %c0_i32_0 = arith.constant 0 : i32
    return %arg0, %c0_i32 : i32, i32
  }
}

</mosaic_0001>

<bundles_post_ra>
// kernel: tpu_custom_call.1
= control target key start
LH: loop header
LB: loop body
LE: loop exit
PB: predicated region body
PF: predicated region fallthrough
CT: control target
= control target key end

     0   :  { %7 = vsyncpa [#allocation3], 0  ;;  %s358_s0 = inlined_call_operand.hbm [shape: f32[45,128], index: 0, kind: input, shape index: {}]   ;;  %s359_s1 = inlined_call_operand.hbm [shape: f32[45,128], index: 1, kind: input, shape index: {}]   ;;  %s360_s2 = inlined_call_operand.hbm [shape: f32[45,128], index: 2, kind: output, shape index: {}]  }
   0x1   :  { %8 = vsyncpa [#allocation6], 0 }
   0x2   :  { %9 = vsyncpa [#allocation4], 0  ;;  %s262_s9 = smov [#allocation2]   ;;  %s190_s13 = scalar_lea.hbm %s358_s0, 768 }
   0x3   :  { %s15_s10 = sshll.u32 %s262_s9, 4  ;;  %p191_p0 = scmp.ne.s32.totalorder %s358_s0, %s190_s13  ;;  %s16_s10 = int_to_ptr.vmem [resolvable:$true] %s15_s10 }
   0x4   :  { %p194_p1 = scmp.lt.u32.totalorder %s190_s13, %s358_s0 }
   0x6   :  { %p196_p2 = pnand %p194_p1, %p191_p0 }
   0x8   :  { %199 = shalt.err (!%p196_p2)
}
   0x9   :  { %s200_s18 = scalar_lea.vmem %s16_s10, 768  ;;  %p205_p4 = scmp.lt.s32.totalorder %s16_s10, %s16_s10 }
   0xa   :  { %p201_p3 = scmp.ne.s32.totalorder %s16_s10, %s200_s18  ;;  %p206_p5 = scmp.lt.s32.totalorder %s200_s18, %s200_s18 }
   0xc   :  { %p207_p6 = por %p206_p5, %p205_p4 }
   0xe   :  { %p208_p7 = pnand %p207_p6, %p201_p3 }
  0x10   :  { %211 = shalt.err (!%p208_p7)
}
  0x11   :  { %s263_s19 = smov 128   ;;  %s264_s20 = smov 8  }
  0x12   :  { %21 = dma.hbm_to_vmem [thread:$0]  %s358_s0, 768, %s16_s10, [#allocation3], %s263_s19, %s263_s19, %s264_s20  }
  0x13   :  { %s265_s23 = smov [#allocation5]   ;;  %s212_s27 = scalar_lea.hbm %s359_s1, 768 }
  0x14   :  { %s27_s24 = sshll.u32 %s265_s23, 4  ;;  %p213_p8 = scmp.ne.s32.totalorder %s359_s1, %s212_s27  ;;  %s28_s24 = int_to_ptr.vmem [resolvable:$true] %s27_s24 }
  0x15   :  { %p216_p9 = scmp.lt.u32.totalorder %s212_s27, %s359_s1 }
  0x17   :  { %p218_p10 = pnand %p216_p9, %p213_p8 }
  0x19   :  { %221 = shalt.err (!%p218_p10)
}
  0x1a   :  { %s222_s4 = scalar_lea.vmem %s28_s24, 768  ;;  %p227_p12 = scmp.lt.s32.totalorder %s28_s24, %s28_s24 }
  0x1b   :  { %p223_p11 = scmp.ne.s32.totalorder %s28_s24, %s222_s4  ;;  %p228_p13 = scmp.lt.s32.totalorder %s222_s4, %s222_s4 }
  0x1d   :  { %p229_p0 = por %p228_p13, %p227_p12 }
  0x1f   :  { %p230_p1 = pnand %p229_p0, %p223_p11 }
  0x21   :  { %233 = shalt.err (!%p230_p1)
}
  0x22   :  { %33 = dma.hbm_to_vmem [thread:$0]  %s359_s1, 768, %s28_s24, [#allocation6], %s263_s19, %s263_s19, %s264_s20  }
  0x23   :  { %256 = dma.done.wait [#allocation3], 768  }
  0x24   :  { %257 = vsyncadd [#allocation3], 4294966528 }
  0x25   :  { %258 = dma.done.wait [#allocation6], 768  }
  0x26   :  { %259 = vsyncadd [#allocation6], 4294966528  ;;  %v313_v0 = vld [vmem:[#allocation2] sm:$0xff]  ;;  %v315_v1 = vld [vmem:[#allocation2 + $0x8] sm:$0xff]  ;;  %v266_v39 = vmov 0.95  }
  0x27   :  { %v64_v2 = vand.u32 2147483647, %v313_v0  ;;  %v65_v3 = vand.u32 2147483647, %v315_v1  ;;  %v319_v4 = vld [vmem:[#allocation2 + $0x10] sm:$0xff]  ;;  %v322_v8 = vld [vmem:[#allocation2 + $0x18] sm:$0xff] }
  0x28   :  { %v66_v7 = vand.u32 2147483647, %v319_v4  ;;  %v324_v12 = vld [vmem:[#allocation2 + $0x20] sm:$0xff]  ;;  %v67_v13 = vand.u32 2147483647, %v322_v8  ;;  %v328_v17 = vld [vmem:[#allocation2 + $0x28] sm:$0xff] }
  0x29   :  { %v70_v5 = vsub.f32 0.0, %v64_v2  ;;  %v71_v6 = vsub.f32 0.0, %v65_v3  ;;  %v68_v16 = vand.u32 2147483647, %v324_v12  ;;  %v69_v20 = vand.u32 2147483647, %v328_v17 }
  0x2a   :  { %v72_v11 = vsub.f32 0.0, %v66_v7  ;;  %v73_v15 = vsub.f32 0.0, %v67_v13  ;;  %v46_v29 = vld [vmem:[#allocation5] sm:$0xff]  ;;  %v47_v32 = vld [vmem:[#allocation5 + $0x8] sm:$0xff]  ;;  %v52_v35 = vsub.f32 0.0, %v313_v0  ;;  %v48_v36 = vld [vmem:[#allocation5 + $0x10] sm:$0xff] }
  0x2b   :  { %v76_v9 = vmul.f32 1.442695, %v70_v5  ;;  %v78_v10 = vmul.f32 1.442695, %v71_v6  ;;  %v74_v19 = vsub.f32 0.0, %v68_v16  ;;  %v75_v22 = vsub.f32 0.0, %v69_v20 }
  0x2c   :  { %v80_v14 = vmul.f32 1.442695, %v72_v11  ;;  %v82_v18 = vmul.f32 1.442695, %v73_v15  ;;  %vm112_vm0 = vcmp.eq.f32.partialorder %v46_v29, 1.0  ;;  %v53_v37 = vsub.f32 0.0, %v315_v1 }
  0x2d   :  { %166 = vpow2.f32 %v76_v9  ;;  %v84_v21 = vmul.f32 1.442695, %v74_v19  ;;  %v86_v23 = vmul.f32 1.442695, %v75_v22  ;;  %vm113_vm1 = vcmp.eq.f32.partialorder %v47_v32, 1.0  ;;  %v49_v43 = vld [vmem:[#allocation5 + $0x18] sm:$0xff] }
  0x2e   :  { %168 = vpow2.f32 %v78_v10  ;;  %v118_v40 = vsel %vm112_vm0, 0.05, %v266_v39  ;;  %v54_v42 = vsub.f32 0.0, %v319_v4  ;;  %vm114_vm2 = vcmp.eq.f32.partialorder %v48_v36, 1.0  ;;  %v50_v46 = vld [vmem:[#allocation5 + $0x20] sm:$0xff]  ;;  %v51_v61 = vld [vmem:[#allocation5 + $0x28] sm:$0xff] }
  0x2f   :  { %170 = vpow2.f32 %v80_v14  ;;  %v58_v44 = vmax.f32 %v52_v35, 0.0  ;;  %v119_v45 = vsel %vm113_vm1, 0.05, %v266_v39  ;;  %v124_v49 = vmul.f32 %v118_v40, %v313_v0  ;;  %s267_s1 = smov [#allocation7]  }
  0x30   :  { %172 = vpow2.f32 %v82_v18  ;;  %v59_v50 = vmax.f32 %v53_v37, 0.0  ;;  %v55_v51 = vsub.f32 0.0, %v322_v8  ;;  %v120_v54 = vsel %vm114_vm2, 0.05, %v266_v39  ;;  %s147_s6 = sshll.u32 %s267_s1, 4  ;;  %s148_s6 = int_to_ptr.vmem [resolvable:$true] %s147_s6 }
  0x31   :  { %174 = vpow2.f32 %v84_v21  ;;  %vm115_vm3 = vcmp.eq.f32.partialorder %v49_v43, 1.0  ;;  %v125_v56 = vmul.f32 %v119_v45, %v315_v1  ;;  %v60_v57 = vmax.f32 %v54_v42, 0.0  ;;  %s234_s7 = scalar_lea.vmem %s148_s6, 768  ;;  %p239_p3 = scmp.lt.s32.totalorder %s148_s6, %s148_s6 }
  0x32   :  { %176 = vpow2.f32 %v86_v23  ;;  %vm116_vm4 = vcmp.eq.f32.partialorder %v50_v46, 1.0  ;;  %v56_v60 = vsub.f32 0.0, %v324_v12  ;;  %v126_v0 = vmul.f32 %v120_v54, %v319_v4  ;;  %p235_p2 = scmp.ne.s32.totalorder %s148_s6, %s234_s7  ;;  %p240_p4 = scmp.lt.s32.totalorder %s234_s7, %s234_s7 }
  0x33   :  { %v121_v2 = vsel %vm115_vm3, 0.05, %v266_v39  ;;  %v61_v5 = vmax.f32 %v55_v51, 0.0  ;;  %v122_v6 = vsel %vm116_vm4, 0.05, %v266_v39  ;;  %v57_v1 = vsub.f32 0.0, %v328_v17 }
  0x34   :  { %vm117_vm5 = vcmp.eq.f32.partialorder %v51_v61, 1.0  ;;  %v127_v13 = vmul.f32 %v121_v2, %v322_v8  ;;  %v62_v14 = vmax.f32 %v56_v60, 0.0  ;;  %v128_v19 = vmul.f32 %v122_v6, %v324_v12  ;;  %p241_p5 = por %p240_p4, %p239_p3 }
  0x35   :  { %v123_v20 = vsel %vm117_vm5, 0.05, %v266_v39  ;;  %v63_v21 = vmax.f32 %v57_v1, 0.0 }
  0x36   :  { %p242_p6 = pnand %p241_p5, %p235_p2 }
  0x37   :  { %v167_v24 = vpop.eup %166 }
  0x38   :  { %v169_v25 = vpop.eup %168  ;;  %v88_v26 = vadd.f32 1.0, %v167_v24 }
  0x39   :  { %v89_v27 = vadd.f32 1.0, %v169_v25  ;;  %v171_v28 = vpop.eup %170 }
  0x3a   :  { %178 = vlog2.f32 %v88_v26  ;;  %v90_v30 = vadd.f32 1.0, %v171_v28  ;;  %v173_v31 = vpop.eup %172  ;;  %v129_v26 = vmul.f32 %v123_v20, %v328_v17 }
  0x3b   :  { %180 = vlog2.f32 %v89_v27  ;;  %v91_v33 = vadd.f32 1.0, %v173_v31  ;;  %v175_v34 = vpop.eup %174 }
  0x3c   :  { %182 = vlog2.f32 %v90_v30  ;;  %v92_v38 = vadd.f32 1.0, %v175_v34  ;;  %v177_v41 = vpop.eup %176 }
  0x3d   :  { %184 = vlog2.f32 %v91_v33  ;;  %v93_v47 = vadd.f32 1.0, %v177_v41 }
  0x3e   :  { %186 = vlog2.f32 %v92_v38 }
  0x3f   :  { %188 = vlog2.f32 %v93_v47 }
  0x44   :  { %v179_v48 = vpop.eup %178 }
  0x45   :  { %v181_v52 = vpop.eup %180  ;;  %v95_v53 = vmul.f32 0.6931472, %v179_v48 }
  0x46   :  { %v97_v55 = vmul.f32 0.6931472, %v181_v52  ;;  %v183_v58 = vpop.eup %182 }
  0x47   :  { %v106_v59 = vadd.f32 %v95_v53, %v58_v44  ;;  %v99_v63 = vmul.f32 0.6931472, %v183_v58  ;;  %v185_v7 = vpop.eup %184 }
  0x48   :  { %v107_v62 = vadd.f32 %v97_v55, %v59_v50  ;;  %v101_v11 = vmul.f32 0.6931472, %v185_v7  ;;  %v187_v15 = vpop.eup %186 }
  0x49   :  { %v130_v3 = vadd.f32 %v124_v49, %v106_v59  ;;  %v108_v10 = vadd.f32 %v99_v63, %v60_v57  ;;  %v103_v4 = vmul.f32 0.6931472, %v187_v15  ;;  %v189_v22 = vpop.eup %188 }
  0x4a   :  { %v131_v9 = vadd.f32 %v125_v56, %v107_v62  ;;  %v109_v18 = vadd.f32 %v101_v11, %v61_v5  ;;  %v105_v25 = vmul.f32 0.6931472, %v189_v22 }
  0x4b   :  { %136 = vst [vmem:[#allocation7] sm:$0xff] %v130_v3  ;;  %v132_v16 = vadd.f32 %v126_v0, %v108_v10  ;;  %v110_v24 = vadd.f32 %v103_v4, %v62_v14 }
  0x4c   :  { %137 = vst [vmem:[#allocation7 + $0x8] sm:$0xff] %v131_v9  ;;  %v133_v23 = vadd.f32 %v127_v13, %v109_v18  ;;  %v111_v8 = vadd.f32 %v105_v25, %v63_v21 }
  0x4d   :  { %138 = vst [vmem:[#allocation7 + $0x10] sm:$0xff] %v132_v16  ;;  %v134_v27 = vadd.f32 %v128_v19, %v110_v24 }
  0x4e   :  { %139 = vst [vmem:[#allocation7 + $0x18] sm:$0xff] %v133_v23  ;;  %v135_v28 = vadd.f32 %v129_v26, %v111_v8 }
  0x4f   :  { %140 = vst [vmem:[#allocation7 + $0x20] sm:$0xff] %v134_v27 }
  0x50   :  { %141 = vst [vmem:[#allocation7 + $0x28] sm:$0xff] %v135_v28 }
  0x51   :  { %245 = shalt.err (!%p242_p6)
}
  0x52   :  { %s246_s10 = scalar_lea.hbm %s360_s2, 768 }
  0x53   :  { %p247_p7 = scmp.ne.s32.totalorder %s360_s2, %s246_s10  ;;  %p250_p8 = scmp.lt.u32.totalorder %s246_s10, %s360_s2 }
  0x55   :  { %p252_p9 = pnand %p250_p8, %p247_p7 }
  0x57   :  { %255 = shalt.err (!%p252_p9)
}
  0x58   :  { %153 = dma.vmem_to_hbm [thread:$0]  %s148_s6, 768, %s360_s2, [#allocation4], %s263_s19, %s263_s19, %s264_s20  }
  0x59   :  { %260 = dma.done.wait [#allocation4], 768  }
  0x5a   :  { %261 = vsyncadd [#allocation4], 4294966528 }
  0x5b   :  { %157 = vsyncpa [#allocation3], 1 }
  0x5c   :  { %158 = vsyncpa [#allocation6], 1 }
  0x5d   :  { %159 = vsyncpa [#allocation4], 1 }

</bundles_post_ra>
